<compile_context>
chip_gen: v5e
topology: v5e:2x2
jax: 0.10.0
libtpu: 0.0.40
codegen_flags: <defaults>
</compile_context>

<pallas_src>
import jax
import jax.numpy as jnp
from jax.experimental import pallas as pl
from jax.experimental.pallas import tpu as pltpu  # noqa: F401  (TPU backend)

# ---------------- sizes (small, consistent with the module's forward) -------
B = 2               # batch
TAB_FEATURES = 40   # one-hot encoded tabular feature width ("input_size" part)
SEQ = 8             # BERT sequence length
VOCAB = 50          # tiny stand-in vocab
H_BERT = 32         # stand-in BERT hidden size (768 in real BERT)
HEADS = 2
DH = H_BERT // HEADS
FF = 64
D_IN = TAB_FEATURES + H_BERT   # width after torch.cat((x, pooler_output), dim=1)
H1, H2, H3 = 512, 256, 128
OUT = 8             # output_size (number of classes)

EPS = 1e-5
NEG_SLOPE = 0.01


# ======================= Pallas kernel: fused MLP head ======================
def _leaky(x):
    return jnp.where(x > 0, x, NEG_SLOPE * x)


def mlp_head_kernel(xt_ref, xp_ref,
                    w1a_ref, w1b_ref, b1_ref,
                    w2_ref, b2_ref,
                    w3_ref, b3_ref,
                    w4_ref, b4_ref,
                    out_ref):
    """Fused fc1..fc4 + (BN folded) + LeakyReLU + LogSoftmax.

    Weights are bf16 (MXU-native); all accumulation / elementwise math is f32.
    BatchNorm is pre-folded into the weights/biases, Dropout(0.3) is identity
    at inference time.
    """
    # --- fc1 on concatenated [x_tab, pooled]: two partial dots (concat fused)
    h = (jnp.dot(xt_ref[...].astype(jnp.bfloat16), w1a_ref[...],
                 preferred_element_type=jnp.float32)
         + jnp.dot(xp_ref[...].astype(jnp.bfloat16), w1b_ref[...],
                   preferred_element_type=jnp.float32)
         + b1_ref[...])
    h = _leaky(h)
    # Dropout(0.3): identity at inference time.

    # --- fc2 (+ folded BN2) + LeakyReLU
    h = _leaky(jnp.dot(h.astype(jnp.bfloat16), w2_ref[...],
                       preferred_element_type=jnp.float32) + b2_ref[...])

    # --- fc3 (+ folded BN3) + LeakyReLU
    h = _leaky(jnp.dot(h.astype(jnp.bfloat16), w3_ref[...],
                       preferred_element_type=jnp.float32) + b3_ref[...])

    # --- fc4
    logits = jnp.dot(h.astype(jnp.bfloat16), w4_ref[...],
                     preferred_element_type=jnp.float32) + b4_ref[...]

    # --- LogSoftmax(dim=1)
    m = jnp.max(logits, axis=-1, keepdims=True)
    s = logits - m
    lse = jnp.log(jnp.sum(jnp.exp(s), axis=-1, keepdims=True))
    out_ref[...] = (s - lse).astype(out_ref.dtype)
    # NOTE: OUT=8 < 128 -> masked lane store; negligible at this size.
    # TODO(synk): if batch is scaled up (>=128 rows), add a "parallel" batch
    # grid axis so work shards across the 2 TensorCores on v7x.


def mlp_head_forward(x_tab, pooled, fp):
    """(B,40) tabular + (B,32) pooled BERT -> (B,OUT) log-probs, one kernel."""
    return pl.pallas_call(
        mlp_head_kernel,
        out_shape=jax.ShapeDtypeStruct((x_tab.shape[0], OUT), jnp.float32),
        # No grid: every operand is a single whole-array VMEM block
        # (problem is tiny; avoids pipeline per-step overhead of a 1-long grid).
    )(x_tab, pooled,
      fp["w1a"], fp["w1b"], fp["b1"],
      fp["w2"], fp["b2"],
      fp["w3"], fp["b3"],
      fp["w4"], fp["b4"])


# ================= BN folding + bf16 weight preparation (one-time) ==========
def fold_mlp_params(p):
    """Fold inference BatchNorm into the preceding Linear; cast weights to bf16."""
    def fold(w, b, g, be, m, v):
        scale = g * jax.lax.rsqrt(v + EPS)                 # (1, out)
        w_f = (w * scale).astype(jnp.bfloat16)             # per-column scale
        b_f = ((b - m) * scale + be).astype(jnp.float32)
        return w_f, b_f

    w1, b1 = fold(p["w1"], p["b1"], p["g1"], p["be1"], p["m1"], p["v1"])
    w2, b2 = fold(p["w2"], p["b2"], p["g2"], p["be2"], p["m2"], p["v2"])
    w3, b3 = fold(p["w3"], p["b3"], p["g3"], p["be3"], p["m3"], p["v3"])
    return {
        "w1a": w1[:TAB_FEATURES],          # rows hit by x_tab
        "w1b": w1[TAB_FEATURES:],          # rows hit by pooled BERT output
        "b1": b1,
        "w2": w2, "b2": b2,
        "w3": w3, "b3": b3,
        "w4": p["w4"].astype(jnp.bfloat16), "b4": p["b4"].astype(jnp.float32),
    }


# ==================== tiny deterministic BERT stand-in (glue) ===============
# TODO(synk): `BertModel.from_pretrained('bert-base-uncased')` cannot be loaded
# in-script; replaced by a deterministic 1-layer tiny BERT-style encoder whose
# pooler_output plays the same role in the forward pass.
def _layer_norm(x, g, b):
    mu = jnp.mean(x, axis=-1, keepdims=True)
    var = jnp.mean((x - mu) ** 2, axis=-1, keepdims=True)
    return (x - mu) * jax.lax.rsqrt(var + 1e-12) * g + b


def tiny_bert_pooler(p, input_ids, attention_mask):
    Bq, S = input_ids.shape
    h = p["tok_emb"][input_ids] + p["pos_emb"][None, :S, :]
    h = _layer_norm(h, p["ln_e_g"], p["ln_e_b"])

    def heads(y):
        return y.reshape(Bq, S, HEADS, DH).transpose(0, 2, 1, 3)

    q = heads(h @ p["wq"] + p["bq"])
    k = heads(h @ p["wk"] + p["bk"])
    v = heads(h @ p["wv"] + p["bv"])

    scores = jnp.einsum("bhqd,bhkd->bhqk", q, k) / jnp.sqrt(float(DH))
    bias = (1.0 - attention_mask[:, None, None, :].astype(jnp.float32)) * -1e9
    attn = jax.nn.softmax(scores + bias, axis=-1)
    ctx = jnp.einsum("bhqk,bhkd->bhqd", attn, v)
    ctx = ctx.transpose(0, 2, 1, 3).reshape(Bq, S, H_BERT)

    h = _layer_norm(h + ctx @ p["wo"] + p["bo"], p["ln1_g"], p["ln1_b"])
    ff = jax.nn.gelu(h @ p["wf1"] + p["bf1"]) @ p["wf2"] + p["bf2"]
    h = _layer_norm(h + ff, p["ln2_g"], p["ln2_b"])

    # BERT pooler: tanh(dense(hidden_state of [CLS]))
    return jnp.tanh(h[:, 0, :] @ p["w_pool"] + p["b_pool"])


# ============================ parameter init ================================
def init_params(key):
    ks = iter(jax.random.split(key, 64))
    nrm = lambda shape, scale=0.05: (scale * jax.random.normal(next(ks), shape)
                                     ).astype(jnp.float32)
    p = {}

    # --- MLP head (module-defined layers, unfolded f32 master copy) ---
    def lin_bn(win, wout, tag):
        p[f"w{tag}"] = nrm((win, wout))
        p[f"b{tag}"] = nrm((1, wout))
        p[f"g{tag}"] = 1.0 + nrm((1, wout))            # BN gamma
        p[f"be{tag}"] = nrm((1, wout))                 # BN beta
        p[f"m{tag}"] = nrm((1, wout))                  # BN running_mean
        p[f"v{tag}"] = 0.5 + jnp.abs(nrm((1, wout)))   # BN running_var > 0

    lin_bn(D_IN, H1, 1)
    lin_bn(H1, H2, 2)
    lin_bn(H2, H3, 3)
    p["w4"] = nrm((H3, OUT))
    p["b4"] = nrm((1, OUT))

    # --- tiny BERT stand-in ---
    p["tok_emb"] = nrm((VOCAB, H_BERT))
    p["pos_emb"] = nrm((SEQ, H_BERT))
    p["ln_e_g"] = jnp.ones((H_BERT,), jnp.float32)
    p["ln_e_b"] = jnp.zeros((H_BERT,), jnp.float32)
    for n in ("wq", "wk", "wv", "wo"):
        p[n] = nrm((H_BERT, H_BERT))
    for n in ("bq", "bk", "bv", "bo"):
        p[n] = nrm((H_BERT,))
    p["wf1"], p["bf1"] = nrm((H_BERT, FF)), nrm((FF,))
    p["wf2"], p["bf2"] = nrm((FF, H_BERT)), nrm((H_BERT,))
    p["ln1_g"] = jnp.ones((H_BERT,), jnp.float32)
    p["ln1_b"] = jnp.zeros((H_BERT,), jnp.float32)
    p["ln2_g"] = jnp.ones((H_BERT,), jnp.float32)
    p["ln2_b"] = jnp.zeros((H_BERT,), jnp.float32)
    p["w_pool"], p["b_pool"] = nrm((H_BERT, H_BERT)), nrm((H_BERT,))
    return p


# ========================= full forward (jitted) ============================
@jax.jit
def forward(fold_p, bert_p, x_tab, input_ids, attention_mask):
    pooled = tiny_bert_pooler(bert_p, input_ids, attention_mask)   # (B, H_BERT)
    return mlp_head_forward(x_tab, pooled, fold_p)                 # Pallas kernel


# ============================== references ==================================
def mlp_head_ref_folded(x_tab, pooled, fp):
    """Plain-JAX replica of exactly what the kernel computes (bf16 weights)."""
    def dot(a, w):
        return jnp.dot(a.astype(jnp.bfloat16), w, preferred_element_type=jnp.float32)

    h = _leaky(dot(x_tab, fp["w1a"]) + dot(pooled, fp["w1b"]) + fp["b1"])
    h = _leaky(dot(h, fp["w2"]) + fp["b2"])
    h = _leaky(dot(h, fp["w3"]) + fp["b3"])
    logits = dot(h, fp["w4"]) + fp["b4"]
    return jax.nn.log_softmax(logits, axis=1)


def mlp_head_ref_f32(x, p):
    """Original (unfolded, full f32) semantics: fc -> BN -> LeakyReLU stack."""
    def bn(h, g, be, m, v):
        return (h - m) * jax.lax.rsqrt(v + EPS) * g + be

    h = _leaky(bn(x @ p["w1"] + p["b1"], p["g1"], p["be1"], p["m1"], p["v1"]))
    h = _leaky(bn(h @ p["w2"] + p["b2"], p["g2"], p["be2"], p["m2"], p["v2"]))
    h = _leaky(bn(h @ p["w3"] + p["b3"], p["g3"], p["be3"], p["m3"], p["v3"]))
    logits = h @ p["w4"] + p["b4"]
    return jax.nn.log_softmax(logits, axis=1)


if __name__ == "__main__":
    key = jax.random.PRNGKey(0)
    k_param, k_x, k_ids = jax.random.split(key, 3)

    params = init_params(k_param)
    folded = fold_mlp_params(params)     # one-time BN fold + bf16 cast

    # deterministic example inputs
    x_tab = jax.random.normal(k_x, (B, TAB_FEATURES), dtype=jnp.float32)
    input_ids = jax.random.randint(k_ids, (B, SEQ), 0, VOCAB, dtype=jnp.int32)
    attention_mask = jnp.array([[1, 1, 1, 1, 1, 1, 0, 0],
                                [1, 1, 1, 1, 1, 1, 1, 1]], dtype=jnp.int32)

    out = forward(folded, params, x_tab, input_ids, attention_mask)
    out = jax.block_until_ready(out)
    assert out.shape == (B, OUT)

    # --- correctness: Pallas kernel vs same-precision JAX replica -----------
    pooled = tiny_bert_pooler(params, input_ids, attention_mask)
    ref_same = mlp_head_ref_folded(x_tab, pooled, folded)
    assert jnp.allclose(out, ref_same, rtol=1e-3, atol=1e-3), (out, ref_same)

    # --- correctness: vs original unfolded f32 semantics (bf16 rounding) ----
    x_cat = jnp.concatenate([x_tab, pooled], axis=1)
    ref_f32 = mlp_head_ref_f32(x_cat, params)
    assert jnp.allclose(out, ref_f32, rtol=5e-2, atol=5e-2), (out, ref_f32)

    print("KERNEL_OK")
</pallas_src>

<mosaic_0001>
module attributes {stable_mosaic.version = 11 : i64} {
  func.func @mlp_head_kernel(%arg0: memref<2x40xf32, #tpu.memory_space<vmem>>, %arg1: memref<2x32xf32, #tpu.memory_space<vmem>>, %arg2: memref<40x512xbf16, #tpu.memory_space<vmem>>, %arg3: memref<32x512xbf16, #tpu.memory_space<vmem>>, %arg4: memref<1x512xf32, #tpu.memory_space<vmem>>, %arg5: memref<512x256xbf16, #tpu.memory_space<vmem>>, %arg6: memref<1x256xf32, #tpu.memory_space<vmem>>, %arg7: memref<256x128xbf16, #tpu.memory_space<vmem>>, %arg8: memref<1x128xf32, #tpu.memory_space<vmem>>, %arg9: memref<128x8xbf16, #tpu.memory_space<vmem>>, %arg10: memref<1x8xf32, #tpu.memory_space<vmem>>, %arg11: memref<2x8xf32, #tpu.memory_space<vmem>>) attributes {dimension_semantics = [], scalar_prefetch = 0 : i64, scratch_operands = 0 : i64, tpu.core_type = #tpu.core_type<tc>} {
    %c0 = arith.constant 0 : index
    %c0_0 = arith.constant 0 : index
    %0 = vector.load %arg0[%c0, %c0_0] : memref<2x40xf32, #tpu.memory_space<vmem>>, vector<2x40xf32>
    %1 = arith.truncf %0 : vector<2x40xf32> to vector<2x40xbf16>
    %c0_1 = arith.constant 0 : index
    %c0_2 = arith.constant 0 : index
    %2 = vector.load %arg2[%c0_1, %c0_2] : memref<40x512xbf16, #tpu.memory_space<vmem>>, vector<40x512xbf16>
    %cst = arith.constant dense<0.000000e+00> : vector<2x512xf32>
    %3 = tpu.matmul %1, %2, %cst {dimension_numbers = #tpu.dot_dimension_numbers<[1], [0], [0], [1], [0, 0, 1, 1], [], []>} : vector<2x40xbf16>, vector<40x512xbf16>, vector<2x512xf32> -> vector<2x512xf32>
    %c0_3 = arith.constant 0 : index
    %c0_4 = arith.constant 0 : index
    %4 = vector.load %arg1[%c0_3, %c0_4] : memref<2x32xf32, #tpu.memory_space<vmem>>, vector<2x32xf32>
    %5 = arith.truncf %4 : vector<2x32xf32> to vector<2x32xbf16>
    %c0_5 = arith.constant 0 : index
    %c0_6 = arith.constant 0 : index
    %6 = vector.load %arg3[%c0_5, %c0_6] : memref<32x512xbf16, #tpu.memory_space<vmem>>, vector<32x512xbf16>
    %cst_7 = arith.constant dense<0.000000e+00> : vector<2x512xf32>
    %7 = tpu.matmul %5, %6, %cst_7 {dimension_numbers = #tpu.dot_dimension_numbers<[1], [0], [0], [1], [0, 0, 1, 1], [], []>} : vector<2x32xbf16>, vector<32x512xbf16>, vector<2x512xf32> -> vector<2x512xf32>
    %8 = arith.addf %3, %7 : vector<2x512xf32>
    %c0_8 = arith.constant 0 : index
    %c0_9 = arith.constant 0 : index
    %9 = vector.load %arg4[%c0_8, %c0_9] : memref<1x512xf32, #tpu.memory_space<vmem>>, vector<1x512xf32>
    %10 = vector.broadcast %9 : vector<1x512xf32> to vector<2x512xf32>
    %11 = arith.addf %8, %10 : vector<2x512xf32>
    %cst_10 = arith.constant 0.000000e+00 : f32
    %12 = vector.broadcast %cst_10 : f32 to vector<2x512xf32>
    %13 = arith.cmpf ogt, %11, %12 : vector<2x512xf32>
    %cst_11 = arith.constant 0.00999999977 : f32
    %14 = vector.broadcast %cst_11 : f32 to vector<2x512xf32>
    %15 = arith.mulf %14, %11 : vector<2x512xf32>
    %16 = arith.select %13, %11, %15 : vector<2x512xi1>, vector<2x512xf32>
    %17 = arith.truncf %16 : vector<2x512xf32> to vector<2x512xbf16>
    %c0_12 = arith.constant 0 : index
    %c0_13 = arith.constant 0 : index
    %18 = vector.load %arg5[%c0_12, %c0_13] : memref<512x256xbf16, #tpu.memory_space<vmem>>, vector<512x256xbf16>
    %cst_14 = arith.constant dense<0.000000e+00> : vector<2x256xf32>
    %19 = tpu.matmul %17, %18, %cst_14 {dimension_numbers = #tpu.dot_dimension_numbers<[1], [0], [0], [1], [0, 0, 1, 1], [], []>} : vector<2x512xbf16>, vector<512x256xbf16>, vector<2x256xf32> -> vector<2x256xf32>
    %c0_15 = arith.constant 0 : index
    %c0_16 = arith.constant 0 : index
    %20 = vector.load %arg6[%c0_15, %c0_16] : memref<1x256xf32, #tpu.memory_space<vmem>>, vector<1x256xf32>
    %21 = vector.broadcast %20 : vector<1x256xf32> to vector<2x256xf32>
    %22 = arith.addf %19, %21 : vector<2x256xf32>
    %cst_17 = arith.constant 0.000000e+00 : f32
    %23 = vector.broadcast %cst_17 : f32 to vector<2x256xf32>
    %24 = arith.cmpf ogt, %22, %23 : vector<2x256xf32>
    %cst_18 = arith.constant 0.00999999977 : f32
    %25 = vector.broadcast %cst_18 : f32 to vector<2x256xf32>
    %26 = arith.mulf %25, %22 : vector<2x256xf32>
    %27 = arith.select %24, %22, %26 : vector<2x256xi1>, vector<2x256xf32>
    %28 = arith.truncf %27 : vector<2x256xf32> to vector<2x256xbf16>
    %c0_19 = arith.constant 0 : index
    %c0_20 = arith.constant 0 : index
    %29 = vector.load %arg7[%c0_19, %c0_20] : memref<256x128xbf16, #tpu.memory_space<vmem>>, vector<256x128xbf16>
    %cst_21 = arith.constant dense<0.000000e+00> : vector<2x128xf32>
    %30 = tpu.matmul %28, %29, %cst_21 {dimension_numbers = #tpu.dot_dimension_numbers<[1], [0], [0], [1], [0, 0, 1, 1], [], []>} : vector<2x256xbf16>, vector<256x128xbf16>, vector<2x128xf32> -> vector<2x128xf32>
    %c0_22 = arith.constant 0 : index
    %c0_23 = arith.constant 0 : index
    %31 = vector.load %arg8[%c0_22, %c0_23] : memref<1x128xf32, #tpu.memory_space<vmem>>, vector<1x128xf32>
    %32 = vector.broadcast %31 : vector<1x128xf32> to vector<2x128xf32>
    %33 = arith.addf %30, %32 : vector<2x128xf32>
    %cst_24 = arith.constant 0.000000e+00 : f32
    %34 = vector.broadcast %cst_24 : f32 to vector<2x128xf32>
    %35 = arith.cmpf ogt, %33, %34 : vector<2x128xf32>
    %cst_25 = arith.constant 0.00999999977 : f32
    %36 = vector.broadcast %cst_25 : f32 to vector<2x128xf32>
    %37 = arith.mulf %36, %33 : vector<2x128xf32>
    %38 = arith.select %35, %33, %37 : vector<2x128xi1>, vector<2x128xf32>
    %39 = arith.truncf %38 : vector<2x128xf32> to vector<2x128xbf16>
    %c0_26 = arith.constant 0 : index
    %c0_27 = arith.constant 0 : index
    %40 = vector.load %arg9[%c0_26, %c0_27] : memref<128x8xbf16, #tpu.memory_space<vmem>>, vector<128x8xbf16>
    %cst_28 = arith.constant dense<0.000000e+00> : vector<2x8xf32>
    %41 = tpu.matmul %39, %40, %cst_28 {dimension_numbers = #tpu.dot_dimension_numbers<[1], [0], [0], [1], [0, 0, 1, 1], [], []>} : vector<2x128xbf16>, vector<128x8xbf16>, vector<2x8xf32> -> vector<2x8xf32>
    %c0_29 = arith.constant 0 : index
    %c0_30 = arith.constant 0 : index
    %42 = vector.load %arg10[%c0_29, %c0_30] : memref<1x8xf32, #tpu.memory_space<vmem>>, vector<1x8xf32>
    %43 = vector.broadcast %42 : vector<1x8xf32> to vector<2x8xf32>
    %44 = arith.addf %41, %43 : vector<2x8xf32>
    %cst_31 = arith.constant dense<0xFF800000> : vector<2xf32>
    %45 = vector.multi_reduction <maximumf>, %44, %cst_31 [1] : vector<2x8xf32> to vector<2xf32>
    %46 = vector.shape_cast %45 : vector<2xf32> to vector<2x1xf32>
    %47 = vector.broadcast %46 : vector<2x1xf32> to vector<2x8xf32>
    %48 = arith.subf %44, %47 : vector<2x8xf32>
    %49 = math.exp %48 : vector<2x8xf32>
    %cst_32 = arith.constant dense<0.000000e+00> : vector<2xf32>
    %50 = vector.multi_reduction <add>, %49, %cst_32 [1] : vector<2x8xf32> to vector<2xf32>
    %51 = vector.shape_cast %50 : vector<2xf32> to vector<2x1xf32>
    %52 = math.log %51 : vector<2x1xf32>
    %53 = vector.broadcast %52 : vector<2x1xf32> to vector<2x8xf32>
    %54 = arith.subf %48, %53 : vector<2x8xf32>
    %c0_33 = arith.constant 0 : index
    %c0_34 = arith.constant 0 : index
    %55 = vector.load %arg11[%c0_33, %c0_34] : memref<2x8xf32, #tpu.memory_space<vmem>>, vector<2x8xf32>
    tpu.vector_store %arg11[%c0_33, %c0_34], %54 {strides = array<i32>} : memref<2x8xf32, #tpu.memory_space<vmem>>, vector<2x8xf32>,
    return
  }
}

</mosaic_0001>

<bundles_post_ra>
// kernel: forward.1
= control target key start
LH: loop header
LB: loop body
LE: loop exit
PB: predicated region body
PF: predicated region fallthrough
CT: control target
= control target key end

     0   :  { %16 = vsyncpa [#allocation3], 0  ;;  %s1984_s0 = inlined_call_operand.vmem [shape: f32[2,40], index: 0, kind: input, shape index: {}]   ;;  %s1985_s1 = inlined_call_operand.vmem [shape: f32[2,32], index: 1, kind: input, shape index: {}]   ;;  %s1986_s2 = inlined_call_operand.vmem [shape: bf16[40,512], index: 2, kind: input, shape index: {}]   ;;  %s1987_s3 = inlined_call_operand.vmem [shape: bf16[32,512], index: 3, kind: input, shape index: {}]   ;;  %s1988_s4 = inlined_call_operand.vmem [shape: f32[1,512], index: 4, kind: input, shape index: {}]   ;;  %s1989_s5 = inlined_call_operand.hbm [shape: bf16[512,256], index: 5, kind: input, shape index: {}]   ;;  %s1990_s6 = inlined_call_operand.vmem [shape: f32[1,256], index: 6, kind: input, shape index: {}]   ;;  %s1991_s7 = inlined_call_operand.vmem [shape: bf16[256,128], index: 7, kind: input, shape index: {}]   ;;  %s1992_s8 = inlined_call_operand.vmem [shape: f32[1,128], index: 8, kind: input, shape index: {}]   ;;  %s1993_s9 = inlined_call_operand.vmem [shape: bf16[128,8], index: 9, kind: input, shape index: {}]   ;;  %s1994_s10 = inlined_call_operand.vmem [shape: f32[1,8], index: 10, kind: input, shape index: {}]   ;;  %s1995_s11 = inlined_call_operand.hbm [shape: f32[2,8], index: 11, kind: output, shape index: {}]  }
   0x1   :  { %17 = vsyncpa [#allocation4], 0  ;;  %s32_s19 = sshll.u32 %s1989_s5, 4  ;;  %s1689_s20 = smov [#allocation2]   ;;  %s33_s19 = int_to_ptr.hbm [resolvable:$true] %s32_s19 }
   0x2   :  { %s34_s21 = sshll.u32 %s1689_s20, 4  ;;  %s1690_s22 = smov 128   ;;  %s35_s21 = int_to_ptr.vmem [resolvable:$true] %s34_s21 }
   0x3   :  { %s1691_s23 = smov 8  }
   0x4   :  { %40 = dma.hbm_to_vmem [thread:$0]  %s33_s19, 8192, %s35_s21, [#allocation3], %s1690_s22, %s1690_s22, %s1691_s23  }
   0x5   :  { %1685 = dma.done.wait [#allocation3], 8192  }
   0x6   :  { %1686 = vsyncadd [#allocation3], 4294959104  ;;  %v1535_v0 = vld [vmem:[%s1987_s3 + $0x24] sm:$0xf]  ;;  %v1119_v1 = vld [vmem:[%s1987_s3 + $0x30] sm:$0xf0] }
   0x7   :  { %v1125_v2 = vld [vmem:[%s1987_s3 + $0x28] sm:$0xf]  ;;  %v1122_v3 = vor.u32 %v1535_v0, %v1119_v1  ;;  %v1538_v4 = vld [vmem:[%s1987_s3 + $0x34] sm:$0xf0]  ;;  %v1536_v5 = vld [vmem:[%s1987_s3 + $0x2c] sm:$0xf] }
   0x8   :  { %v1127_v6 = vld [vmem:[%s1987_s3 + $0x38] sm:$0xf0]  ;;  %v1126_v7 = vor.u32 %v1538_v4, %v1125_v2  ;;  %v1531_v9 = vld [vmem:[%s1987_s3 + $0x4] sm:$0xf]  ;;  %v1103_v10 = vld [vmem:[%s1987_s3 + $0x10] sm:$0xf0] }
   0x9   :  { %v1130_v8 = vor.u32 %v1536_v5, %v1127_v6  ;;  %v1109_v11 = vld [vmem:[%s1987_s3 + $0x8] sm:$0xf]  ;;  %141 = vmatpush.bf16.msra.mxu1 %v1122_v3  ;;  %v1106_v12 = vor.u32 %v1531_v9, %v1103_v10  ;;  %v1534_v13 = vld [vmem:[%s1987_s3 + $0x14] sm:$0xf0]  ;;  %v1532_v14 = vld [vmem:[%s1987_s3 + $0xc] sm:$0xf] }
   0xa   :  { %v1111_v15 = vld [vmem:[%s1987_s3 + $0x18] sm:$0xf0]  ;;  %154 = vmatpush.bf16.msra.mxu2 %v1126_v7  ;;  %v1110_v16 = vor.u32 %v1534_v13, %v1109_v11  ;;  %v68_v18 = vld [vmem:[%s1985_s1] sm:$0x3]  ;;  %v67_v20 = vld [vmem:[%s1986_s2 + $0x48] sm:$0xff]  ;;  %vm118_vm0 = vcmask 261120  }
   0xb   :  { %167 = vmatpush.bf16.msra.mxu3 %v1130_v8  ;;  %v1114_v17 = vor.u32 %v1532_v14, %v1111_v15  ;;  %v66_v19 = vld [vmem:[%s1986_s2 + $0x40] sm:$0xff]  ;;  %v202_v23 = vunpack.c.l.b16 %v67_v20  ;;  %v1801_v24 = vpack.c.bf16 %v68_v18, %v68_v18  ;;  %vm228_vm1 = vcmask 1043456   ;;  %v1529_v30 = vld [vmem:[%s1986_s2 + $0x2c] sm:$0xf0]  ;;  %v1155_v32 = vld [vmem:[%s1986_s2 + $0x30] sm:$0xf0] }
   0xc   :  { %v200_v21 = vunpack.c.l.b16 %v66_v19  ;;  %v201_v22 = vunpack.c.h.b16 %v66_v19  ;;  %v203_v25 = vunpack.c.h.b16 %v67_v20  ;;  %v1153_v29 = vld [vmem:[%s1986_s2 + $0x20] sm:$0xf]  ;;  %v1527_v31 = vld [vmem:[%s1986_s2 + $0x24] sm:$0xf]  ;;  %v1161_v33 = vld [vmem:[%s1986_s2 + $0x28] sm:$0xf] }
   0xd   :  { %142 = vmatpush.bf16.msra.mxu1 %v1106_v12  ;;  %v214_v28 = vpack.c.b16 %v202_v23, %v202_v23  ;;  %v1530_v34 = vld [vmem:[%s1986_s2 + $0x34] sm:$0xf0]  ;;  %v1117_v38 = vld [vmem:[%s1987_s3 + $0x20] sm:$0xf]  ;;  %v1154_v40 = vor.u32 %v1529_v30, %v1153_v29  ;;  %v1537_v42 = vld [vmem:[%s1987_s3 + $0x2c] sm:$0xf0]  ;;  %v1158_v47 = vor.u32 %v1527_v31, %v1155_v32 }
   0xe   :  { %v212_v26 = vpack.c.b16 %v200_v21, %v200_v21  ;;  %v213_v27 = vpack.c.b16 %v201_v22, %v201_v22  ;;  %155 = vmatpush.bf16.msra.mxu2 %v1110_v16  ;;  %v215_v39 = vpack.c.b16 %v203_v25, %v203_v25  ;;  %v1137_v41 = vld [vmem:[%s1986_s2] sm:$0xf]  ;;  %v1525_v43 = vld [vmem:[%s1986_s2 + $0xc] sm:$0xf0]  ;;  %v1118_v44 = vor.u32 %v1537_v42, %v1117_v38  ;;  %v1523_v49 = vld [vmem:[%s1986_s2 + $0x4] sm:$0xf] }
   0xf   :  { %168 = vmatpush.bf16.msra.mxu3 %v1114_v17  ;;  %v236_v37 = vsel %vm228_vm1, %v214_v28, 0  ;;  %v1101_v45 = vld [vmem:[%s1987_s3] sm:$0xf]  ;;  %v1533_v46 = vld [vmem:[%s1987_s3 + $0xc] sm:$0xf0]  ;;  %v1162_v48 = vor.u32 %v1530_v34, %v1161_v33  ;;  %v1138_v56 = vor.u32 %v1525_v43, %v1137_v41  ;;  %vm224_vm2 = vcmask 326656  }
  0x10   :  { %v230_v35 = vsel %vm228_vm1, %v212_v26, 0  ;;  %v233_v36 = vsel %vm228_vm1, %v213_v27, 0  ;;  %1132 = vmatmul.msk.bf16.vlgmr.msra.gmra.mxu1 %vm118_vm0, %v1801_v24  ;;  %v1139_v50 = vld [vmem:[%s1986_s2 + $0x10] sm:$0xf0]  ;;  %v1145_v51 = vld [vmem:[%s1986_s2 + $0x8] sm:$0xf]  ;;  %128 = vmatpush.bf16.msra.mxu0 %v1118_v44  ;;  %v1102_v54 = vor.u32 %v1533_v46, %v1101_v45 }
  0x11   :  { %1133 = vmatmul.msk.bf16.vlgmr.msra.gmra.mxu2 %vm118_vm0, %v1801_v24  ;;  %259 = vmatpush.bf16.msrb.mxu1 %v233_v36  ;;  %v1526_v52 = vld [vmem:[%s1986_s2 + $0x14] sm:$0xf0]  ;;  %v239_v53 = vsel %vm228_vm1, %v215_v39, 0  ;;  %v1293_v55 = vld [vmem:[#allocation2 + $0xf0] sm:$0xf]  ;;  %v1142_v0 = vor.u32 %v1523_v49, %v1139_v50  ;;  %vm1068_vm10 = vcmask 58368  }
  0x12   :  { %1134 = vmatmul.msk.bf16.vlgmr.msra.gmra.mxu3 %vm118_vm0, %v1801_v24  ;;  %272 = vmatpush.bf16.msrb.mxu2 %v236_v37  ;;  %v1570_v57 = vld [vmem:[#allocation2 + $0xf4] sm:$0xf0]  ;;  %v1229_v58 = vld [vmem:[#allocation2 + $0x70] sm:$0xf]  ;;  %v1528_v60 = vld [vmem:[%s1986_s2 + $0x2c] sm:$0xf]  ;;  %v1146_v1 = vor.u32 %v1526_v52, %v1145_v51 }
  0x13   :  { %246 = vmatpush.bf16.msrb.mxu3 %v230_v35  ;;  %v1554_v59 = vld [vmem:[#allocation2 + $0x74] sm:$0xf0]  ;;  %v1357_v62 = vld [vmem:[#allocation2 + $0x170] sm:$0xf]  ;;  %v1163_v2 = vld [vmem:[%s1986_s2 + $0x38] sm:$0xf0]  ;;  %v1294_v5 = vor.u32 %v1570_v57, %v1293_v55 }
  0x14   :  { %v1230_v61 = vor.u32 %v1554_v59, %v1229_v58  ;;  %v1586_v63 = vld [vmem:[#allocation2 + $0x174] sm:$0xf0]  ;;  %v1221_v3 = vld [vmem:[#allocation2 + $0x60] sm:$0xf]  ;;  %v1552_v4 = vld [vmem:[#allocation2 + $0x64] sm:$0xf0]  ;;  %129 = vmatpush.bf16.msra.mxu0 %v1102_v54  ;;  %v1166_v11 = vor.u32 %v1528_v60, %v1163_v2 }
  0x15   :  { %260 = vmatpush.bf16.msrb.mxu1 %v1158_v47  ;;  %v1285_v6 = vld [vmem:[#allocation2 + $0xe0] sm:$0xf]  ;;  %v1568_v7 = vld [vmem:[#allocation2 + $0xe4] sm:$0xf0]  ;;  %v1358_v8 = vor.u32 %v1586_v63, %v1357_v62  ;;  %v1222_v9 = vor.u32 %v1552_v4, %v1221_v3  ;;  %v1524_v14 = vld [vmem:[%s1986_s2 + $0xc] sm:$0xf] }
  0x16   :  { %273 = vmatpush.bf16.msrb.mxu2 %v1162_v48  ;;  %v56_v10 = vld [vmem:[%s1984_s0] sm:$0x3]  ;;  %v1584_v13 = vld [vmem:[#allocation2 + $0x164] sm:$0xf0]  ;;  %v1147_v15 = vld [vmem:[%s1986_s2 + $0x18] sm:$0xf0]  ;;  %v1286_v16 = vor.u32 %v1568_v7, %v1285_v6 }
  0x17   :  { %247 = vmatpush.bf16.msrb.mxu3 %v1154_v40  ;;  %v1349_v12 = vld [vmem:[#allocation2 + $0x160] sm:$0xf]  ;;  %1131 = vmatmul.msk.bf16.vlgmr.msra.gmra.mxu0 %vm118_vm0, %v1801_v24  ;;  %v1213_v17 = vld [vmem:[#allocation2 + $0x50] sm:$0xf]  ;;  %v1550_v18 = vld [vmem:[#allocation2 + $0x54] sm:$0xf0]  ;;  %v57_v19 = vpack.c.bf16 %v56_v10, %v56_v10  ;;  %v1150_v26 = vor.u32 %v1524_v14, %v1147_v15 }
  0x18   :  { %713 = vmatpush.bf16.msrb.mxu0 %v1230_v61  ;;  %v1277_v20 = vld [vmem:[#allocation2 + $0xd0] sm:$0xf]  ;;  %v1566_v21 = vld [vmem:[#allocation2 + $0xd4] sm:$0xf0]  ;;  %v1350_v22 = vor.u32 %v1584_v13, %v1349_v12  ;;  %v1214_v24 = vor.u32 %v1550_v18, %v1213_v17  ;;  %v1269_v28 = vld [vmem:[#allocation2 + $0xc0] sm:$0xf] }
  0x19   :  { %261 = vmatpush.bf16.msrb.mxu1 %v1142_v0  ;;  %v1341_v23 = vld [vmem:[#allocation2 + $0x150] sm:$0xf]  ;;  %v1582_v25 = vld [vmem:[#allocation2 + $0x154] sm:$0xf0]  ;;  %v1278_v27 = vor.u32 %v1566_v21, %v1277_v20  ;;  %v1564_v29 = vld [vmem:[#allocation2 + $0xc4] sm:$0xf0] }
  0x1a   :  { %274 = vmatpush.bf16.msrb.mxu2 %v1146_v1  ;;  %v1342_v30 = vor.u32 %v1582_v25, %v1341_v23  ;;  %v1270_v31 = vor.u32 %v1564_v29, %v1269_v28  ;;  %v1261_v32 = vld [vmem:[#allocation2 + $0xb0] sm:$0xf]  ;;  %v1562_v33 = vld [vmem:[#allocation2 + $0xb4] sm:$0xf0]  ;;  %v1205_v35 = vld [vmem:[#allocation2 + $0x40] sm:$0xf] }
  0x1b   :  { %248 = vmatpush.bf16.msrb.mxu3 %v1138_v56  ;;  %v1262_v34 = vor.u32 %v1562_v33, %v1261_v32  ;;  %v1548_v36 = vld [vmem:[#allocation2 + $0x44] sm:$0xf0]  ;;  %v1333_v37 = vld [vmem:[#allocation2 + $0x140] sm:$0xf]  ;;  %v1197_v43 = vld [vmem:[#allocation2 + $0x30] sm:$0xf] }
  0x1c   :  { %714 = vmatpush.bf16.msrb.mxu0 %v1222_v9  ;;  %v1206_v38 = vor.u32 %v1548_v36, %v1205_v35  ;;  %v1580_v39 = vld [vmem:[#allocation2 + $0x144] sm:$0xf0]  ;;  %v1253_v41 = vld [vmem:[#allocation2 + $0xa0] sm:$0xf]  ;;  %v1546_v45 = vld [vmem:[#allocation2 + $0x34] sm:$0xf0] }
  0x1d   :  { %726 = vmatpush.bf16.msra.mxu1 %v1294_v5  ;;  %v1334_v40 = vor.u32 %v1580_v39, %v1333_v37  ;;  %v1560_v42 = vld [vmem:[#allocation2 + $0xa4] sm:$0xf0]  ;;  %v1325_v46 = vld [vmem:[#allocation2 + $0x130] sm:$0xf]  ;;  %v1578_v47 = vld [vmem:[#allocation2 + $0x134] sm:$0xf0]  ;;  %v1198_v48 = vor.u32 %v1546_v45, %v1197_v43 }
  0x1e   :  { %739 = vmatpush.bf16.msra.mxu2 %v1358_v8  ;;  %v1254_v44 = vor.u32 %v1560_v42, %v1253_v41  ;;  %v1326_v49 = vor.u32 %v1578_v47, %v1325_v46  ;;  %v1421_v50 = vld [vmem:[#allocation2 + $0x1f0] sm:$0xf]  ;;  %v1602_v51 = vld [vmem:[#allocation2 + $0x1f4] sm:$0xf0]  ;;  %v1189_v56 = vld [vmem:[#allocation2 + $0x20] sm:$0xf] }
  0x1f   :  { %285 = vmatpush.bf16.msra.mxu3 %v239_v53  ;;  %v1422_v52 = vor.u32 %v1602_v51, %v1421_v50  ;;  %v1245_v53 = vld [vmem:[#allocation2 + $0x90] sm:$0xf]  ;;  %v1558_v54 = vld [vmem:[#allocation2 + $0x94] sm:$0xf0]  ;;  %v1544_v57 = vld [vmem:[#allocation2 + $0x24] sm:$0xf0] }
  0x20   :  { %1168 = vmatmul.msk.bf16.vlgmr.msrb.gmra.mxu1 %vm224_vm2, %v57_v19  ;;  %715 = vmatpush.bf16.msrb.mxu0 %v1214_v24  ;;  %v1246_v55 = vor.u32 %v1558_v54, %v1245_v53  ;;  %v1317_v58 = vld [vmem:[#allocation2 + $0x120] sm:$0xf]  ;;  %v1190_v59 = vor.u32 %v1544_v57, %v1189_v56  ;;  %v1576_v60 = vld [vmem:[#allocation2 + $0x124] sm:$0xf0]  ;;  %v1569_v3 = vld [vmem:[#allocation2 + $0xf4] sm:$0xf] }
  0x21   :  { %727 = vmatpush.bf16.msra.mxu1 %v1286_v16  ;;  %1169 = vmatmul.msk.bf16.vlgmr.msrb.gmra.mxu2 %vm224_vm2, %v57_v19  ;;  %v1413_v61 = vld [vmem:[#allocation2 + $0x1e0] sm:$0xf]  ;;  %v1600_v62 = vld [vmem:[#allocation2 + $0x1e4] sm:$0xf0]  ;;  %v1318_v63 = vor.u32 %v1576_v60, %v1317_v58  ;;  %v1295_v5 = vld [vmem:[#allocation2 + $0xf8] sm:$0xf0] }
  0x22   :  { %740 = vmatpush.bf16.msra.mxu2 %v1350_v22  ;;  %1167 = vmatmul.msk.bf16.vlgmr.msrb.gmra.mxu3 %vm224_vm2, %v57_v19  ;;  %v1414_v0 = vor.u32 %v1600_v62, %v1413_v61  ;;  %v1237_v1 = vld [vmem:[#allocation2 + $0x80] sm:$0xf]  ;;  %v1556_v2 = vld [vmem:[#allocation2 + $0x84] sm:$0xf0]  ;;  %v1181_v6 = vld [vmem:[#allocation2 + $0x10] sm:$0xf]  ;;  %v1298_v8 = vor.u32 %v1569_v3, %v1295_v5 }
  0x23   :  { %286 = vmatpush.bf16.msra.mxu3 %v1166_v11  ;;  %v1238_v4 = vor.u32 %v1556_v2, %v1237_v1  ;;  %v1542_v7 = vld [vmem:[#allocation2 + $0x14] sm:$0xf0]  ;;  %v1309_v10 = vld [vmem:[#allocation2 + $0x110] sm:$0xf]  ;;  %v1567_v16 = vld [vmem:[#allocation2 + $0xe4] sm:$0xf] }
  0x24   :  { %716 = vmatpush.bf16.msrb.mxu0 %v1206_v38  ;;  %v1182_v9 = vor.u32 %v1542_v7, %v1181_v6  ;;  %v1574_v11 = vld [vmem:[#allocation2 + $0x114] sm:$0xf0]  ;;  %v1405_v12 = vld [vmem:[#allocation2 + $0x1d0] sm:$0xf]  ;;  %v1287_v17 = vld [vmem:[#allocation2 + $0xe8] sm:$0xf0] }
  0x25   :  { %728 = vmatpush.bf16.msra.mxu1 %v1278_v27  ;;  %v1310_v13 = vor.u32 %v1574_v11, %v1309_v10  ;;  %v1598_v14 = vld [vmem:[#allocation2 + $0x1d4] sm:$0xf0]  ;;  %v1290_v18 = vor.u32 %v1567_v16, %v1287_v17  ;;  %v1540_v20 = vld [vmem:[#allocation2 + $0x4] sm:$0xf0]  ;;  %v1301_v21 = vld [vmem:[#allocation2 + $0x100] sm:$0xf] }
  0x26   :  { %741 = vmatpush.bf16.msra.mxu2 %v1342_v30  ;;  %v1406_v15 = vor.u32 %v1598_v14, %v1405_v12  ;;  %v1572_v23 = vld [vmem:[#allocation2 + $0x104] sm:$0xf0]  ;;  %v1397_v25 = vld [vmem:[#allocation2 + $0x1c0] sm:$0xf]  ;;  %v1553_v28 = vld [vmem:[#allocation2 + $0x74] sm:$0xf] }
  0x27   :  { %287 = vmatpush.bf16.msra.mxu3 %v1150_v26  ;;  %v1596_v26 = vld [vmem:[#allocation2 + $0x1c4] sm:$0xf0]  ;;  %v1302_v24 = vor.u32 %v1572_v23, %v1301_v21  ;;  %v1231_v29 = vld [vmem:[#allocation2 + $0x78] sm:$0xf0]  ;;  %v1585_v30 = vld [vmem:[#allocation2 + $0x174] sm:$0xf] }
  0x28   :  { %717 = vmatpush.bf16.msrb.mxu0 %v1198_v48  ;;  %v1398_v27 = vor.u32 %v1596_v26, %v1397_v25  ;;  %v1359_v32 = vld [vmem:[#allocation2 + $0x178] sm:$0xf0]  ;;  %v1565_v33 = vld [vmem:[#allocation2 + $0xd4] sm:$0xf]  ;;  %v1389_v36 = vld [vmem:[#allocation2 + $0x1b0] sm:$0xf] }
  0x29   :  { %729 = vmatpush.bf16.msra.mxu1 %v1270_v31  ;;  %v1234_v31 = vor.u32 %v1553_v28, %v1231_v29  ;;  %v1279_v35 = vld [vmem:[#allocation2 + $0xd8] sm:$0xf0]  ;;  %v1594_v38 = vld [vmem:[#allocation2 + $0x1b4] sm:$0xf0]  ;;  %v1551_v39 = vld [vmem:[#allocation2 + $0x64] sm:$0xf] }
  0x2a   :  { %742 = vmatpush.bf16.msra.mxu2 %v1334_v40  ;;  %v1282_v37 = vor.u32 %v1565_v33, %v1279_v35  ;;  %v1223_v40 = vld [vmem:[#allocation2 + $0x68] sm:$0xf0]  ;;  %v1390_v41 = vor.u32 %v1594_v38, %v1389_v36  ;;  %v1583_v43 = vld [vmem:[#allocation2 + $0x164] sm:$0xf]  ;;  %v1592_v50 = vld [vmem:[#allocation2 + $0x1a4] sm:$0xf0] }
  0x2b   :  { %752 = vmatpush.bf16.msrb.mxu3 %v1422_v52  ;;  %v1226_v42 = vor.u32 %v1551_v39, %v1223_v40  ;;  %v1563_v46 = vld [vmem:[#allocation2 + $0xc4] sm:$0xf]  ;;  %v1271_v47 = vld [vmem:[#allocation2 + $0xc8] sm:$0xf0]  ;;  %v1549_v52 = vld [vmem:[#allocation2 + $0x54] sm:$0xf] }
  0x2c   :  { %718 = vmatpush.bf16.msrb.mxu0 %v1190_v59  ;;  %v1274_v48 = vor.u32 %v1563_v46, %v1271_v47  ;;  %v1215_v53 = vld [vmem:[#allocation2 + $0x58] sm:$0xf0]  ;;  %v1581_v54 = vld [vmem:[#allocation2 + $0x154] sm:$0xf]  ;;  %v1373_v61 = vld [vmem:[#allocation2 + $0x190] sm:$0xf] }
  0x2d   :  { %730 = vmatpush.bf16.msra.mxu1 %v1262_v34  ;;  %v1362_v34 = vor.u32 %v1585_v30, %v1359_v32  ;;  %v1343_v56 = vld [vmem:[#allocation2 + $0x158] sm:$0xf0]  ;;  %v1561_v58 = vld [vmem:[#allocation2 + $0xb4] sm:$0xf]  ;;  %v1590_v62 = vld [vmem:[#allocation2 + $0x194] sm:$0xf0] }
  0x2e   :  { %743 = vmatpush.bf16.msra.mxu2 %v1326_v49  ;;  %v1381_v49 = vld [vmem:[#allocation2 + $0x1a0] sm:$0xf]  ;;  %v1346_v57 = vor.u32 %v1581_v54, %v1343_v56  ;;  %v1263_v59 = vld [vmem:[#allocation2 + $0xb8] sm:$0xf0]  ;;  %v1207_v1 = vld [vmem:[#allocation2 + $0x48] sm:$0xf0] }
  0x2f   :  { %753 = vmatpush.bf16.msrb.mxu3 %v1414_v0  ;;  %v1382_v51 = vor.u32 %v1592_v50, %v1381_v49  ;;  %v1266_v60 = vor.u32 %v1561_v58, %v1263_v59  ;;  %v1547_v0 = vld [vmem:[#allocation2 + $0x44] sm:$0xf]  ;;  %v1255_v7 = vld [vmem:[#allocation2 + $0xa8] sm:$0xf0]  ;;  %v1588_v10 = vld [vmem:[#allocation2 + $0x184] sm:$0xf0] }
  0x30   :  { %719 = vmatpush.bf16.msrb.mxu0 %v1182_v9  ;;  %v1579_v2 = vld [vmem:[#allocation2 + $0x144] sm:$0xf]  ;;  %v1210_v3 = vor.u32 %v1547_v0, %v1207_v1  ;;  %v1365_v9 = vld [vmem:[#allocation2 + $0x180] sm:$0xf]  ;;  %v1545_v12 = vld [vmem:[#allocation2 + $0x34] sm:$0xf] }
  0x31   :  { %731 = vmatpush.bf16.msra.mxu1 %v1254_v44  ;;  %v1351_v44 = vld [vmem:[#allocation2 + $0x168] sm:$0xf0]  ;;  %v1559_v6 = vld [vmem:[#allocation2 + $0xa4] sm:$0xf]  ;;  %v1366_v11 = vor.u32 %v1588_v10, %v1365_v9  ;;  %v1577_v14 = vld [vmem:[#allocation2 + $0x134] sm:$0xf] }
  0x32   :  { %1170 = vmatmul.msk.bf16.vlgmr.msra.gmra.mxu3 %vm224_vm2, %v57_v19  ;;  %744 = vmatpush.bf16.msra.mxu2 %v1318_v63  ;;  %v1173_v19 = vld [vmem:[#allocation2] sm:$0xf]  ;;  %v1354_v45 = vor.u32 %v1583_v43, %v1351_v44  ;;  %v1374_v63 = vor.u32 %v1590_v62, %v1373_v61  ;;  %v1327_v17 = vld [vmem:[#allocation2 + $0x138] sm:$0xf0]  ;;  %v1543_v25 = vld [vmem:[#allocation2 + $0x24] sm:$0xf] }
  0x33   :  { %754 = vmatpush.bf16.msrb.mxu3 %v1406_v15  ;;  %v1174_v22 = vor.u32 %v1540_v20, %v1173_v19  ;;  %v1423_v19 = vld [vmem:[#allocation2 + $0x1f8] sm:$0xf0]  ;;  %v1330_v20 = vor.u32 %v1577_v14, %v1327_v17  ;;  %v1319_v28 = vld [vmem:[#allocation2 + $0x128] sm:$0xf0]  ;;  %v1599_v30 = vld [vmem:[#allocation2 + $0x1e4] sm:$0xf] }
  0x34   :  { %v1247_v23 = vld [vmem:[#allocation2 + $0x98] sm:$0xf0]  ;;  %v1239_v35 = vld [vmem:[#allocation2 + $0x88] sm:$0xf0]  ;;  %v1541_v39 = vld [vmem:[#allocation2 + $0x14] sm:$0xf] }
  0x35   :  { %732 = vmatpush.bf16.msra.mxu1 %v1246_v55  ;;  %720 = vmatpush.bf16.msrb.mxu0 %v1174_v22  ;;  %v1218_v55 = vor.u32 %v1549_v52, %v1215_v53  ;;  %v1557_v22 = vld [vmem:[#allocation2 + $0x94] sm:$0xf]  ;;  %v1183_v40 = vld [vmem:[#allocation2 + $0x18] sm:$0xf0]  ;;  %v1175_v52 = vld [vmem:[#allocation2 + $0x8] sm:$0xf0] }
  0x36   :  { %745 = vmatpush.bf16.msra.mxu2 %v1310_v13  ;;  %v1199_v13 = vld [vmem:[#allocation2 + $0x38] sm:$0xf0]  ;;  %v1250_v26 = vor.u32 %v1557_v22, %v1247_v23  ;;  %v1186_v43 = vor.u32 %v1541_v39, %v1183_v40  ;;  %v1571_v53 = vld [vmem:[#allocation2 + $0x104] sm:$0xf]  ;;  %v1593_v0 = vld [vmem:[#allocation2 + $0x1b4] sm:$0xf] }
  0x37   :  { %755 = vmatpush.bf16.msrb.mxu3 %v1398_v27  ;;  %v1202_v16 = vor.u32 %v1545_v12, %v1199_v13  ;;  %v1575_v27 = vld [vmem:[#allocation2 + $0x124] sm:$0xf]  ;;  %v1311_v44 = vld [vmem:[#allocation2 + $0x118] sm:$0xf0]  ;;  %v1589_v9 = vld [vmem:[#allocation2 + $0x194] sm:$0xf] }
  0x38   :  { %v1322_v32 = vor.u32 %v1575_v27, %v1319_v28  ;;  %v1407_v47 = vld [vmem:[#allocation2 + $0x1d8] sm:$0xf0]  ;;  %v1595_v56 = vld [vmem:[#allocation2 + $0x1c4] sm:$0xf]  ;;  %v1367_v23 = vld [vmem:[#allocation2 + $0x188] sm:$0xf0] }
  0x39   :  { %733 = vmatpush.bf16.msra.mxu1 %v1238_v4  ;;  %765 = vmatpush.bf16.msra.mxu0 %v1234_v31  ;;  %v1335_v4 = vld [vmem:[#allocation2 + $0x148] sm:$0xf0]  ;;  %v1391_v1 = vld [vmem:[#allocation2 + $0x1b8] sm:$0xf0]  ;;  %v1587_v22 = vld [vmem:[#allocation2 + $0x184] sm:$0xf] }
  0x3a   :  { %746 = vmatpush.bf16.msra.mxu2 %v1302_v24  ;;  %v1338_v5 = vor.u32 %v1579_v2, %v1335_v4  ;;  %v1191_v24 = vld [vmem:[#allocation2 + $0x28] sm:$0xf0]  ;;  %v1591_v4 = vld [vmem:[#allocation2 + $0x1a4] sm:$0xf]  ;;  %s1089_s14 = sshll.u32 %s1995_s11, 4  ;;  %s1090_s14 = int_to_ptr.hbm [resolvable:$true] %s1089_s14 }
  0x3b   :  { %756 = vmatpush.bf16.msrb.mxu3 %v1390_v41  ;;  %v1194_v29 = vor.u32 %v1543_v25, %v1191_v24  ;;  %v1415_v31 = vld [vmem:[#allocation2 + $0x1e8] sm:$0xf0]  ;;  %v1573_v41 = vld [vmem:[#allocation2 + $0x114] sm:$0xf]  ;;  %v1370_v24 = vor.u32 %v1587_v22, %v1367_v23 }
  0x3c   :  { %v1418_v33 = vor.u32 %v1599_v30, %v1415_v31  ;;  %v1314_v46 = vor.u32 %v1573_v41, %v1311_v44  ;;  %v1610_v44 = vld [vmem:[%s1991_s7 + $0x38] sm:$0xff] }
  0x3d   :  { %778 = vmatpush.bf16.msrb.mxu1 %v1298_v8  ;;  %766 = vmatpush.bf16.msra.mxu0 %v1226_v42  ;;  %v1258_v8 = vor.u32 %v1559_v6, %v1255_v7 }
  0x3e   :  { %791 = vmatpush.bf16.msrb.mxu2 %v1362_v34  ;;  %v1555_v34 = vld [vmem:[#allocation2 + $0x84] sm:$0xf] }
  0x3f   :  { %757 = vmatpush.bf16.msrb.mxu3 %v1382_v51  ;;  %v1242_v36 = vor.u32 %v1555_v34, %v1239_v35  ;;  %v1539_v51 = vld [vmem:[#allocation2 + $0x4] sm:$0xf] }
  0x40   :  { %v1178_v54 = vor.u32 %v1539_v51, %v1175_v52  ;;  %v1604_v51 = vld [vmem:[%s1991_s7 + $0x8] sm:$0xff] }
  0x41   :  { %779 = vmatpush.bf16.msrb.mxu1 %v1290_v18  ;;  %767 = vmatpush.bf16.msra.mxu0 %v1218_v55  ;;  %v1601_v18 = vld [vmem:[#allocation2 + $0x1f4] sm:$0xf]  ;;  %v1303_v55 = vld [vmem:[#allocation2 + $0x108] sm:$0xf0] }
  0x42   :  { %792 = vmatpush.bf16.msrb.mxu2 %v1354_v45  ;;  %v1426_v21 = vor.u32 %v1601_v18, %v1423_v19  ;;  %v1597_v45 = vld [vmem:[#allocation2 + $0x1d4] sm:$0xf]  ;;  %v1306_v58 = vor.u32 %v1571_v53, %v1303_v55  ;;  %v1616_v52 = vld [vmem:[%s1991_s7 + $0x68] sm:$0xff]  ;;  %v1615_v55 = vld [vmem:[%s1991_s7 + $0x60] sm:$0xff] }
  0x43   :  { %758 = vmatpush.bf16.msrb.mxu3 %v1374_v63  ;;  %v1410_v49 = vor.u32 %v1597_v45, %v1407_v47  ;;  %v1608_v45 = vld [vmem:[%s1991_s7 + $0x28] sm:$0xff]  ;;  %v1606_v47 = vld [vmem:[%s1991_s7 + $0x18] sm:$0xff] }
  0x45   :  { %780 = vmatpush.bf16.msrb.mxu1 %v1282_v37  ;;  %768 = vmatpush.bf16.msra.mxu0 %v1210_v3  ;;  %v1394_v3 = vor.u32 %v1593_v0, %v1391_v1  ;;  %v1611_v1 = vld [vmem:[%s1991_s7 + $0x40] sm:$0xff] }
  0x46   :  { %793 = vmatpush.bf16.msrb.mxu2 %v1346_v57  ;;  %v1399_v57 = vld [vmem:[#allocation2 + $0x1c8] sm:$0xf0] }
  0x47   :  { %759 = vmatpush.bf16.msrb.mxu3 %v1366_v11  ;;  %v1402_v59 = vor.u32 %v1595_v56, %v1399_v57  ;;  %v1375_v11 = vld [vmem:[#allocation2 + $0x198] sm:$0xf0] }
  0x48   :  { %v1614_v56 = vld [vmem:[%s1991_s7 + $0x58] sm:$0xff] }
  0x49   :  { %781 = vmatpush.bf16.msrb.mxu1 %v1274_v48  ;;  %769 = vmatpush.bf16.msra.mxu0 %v1202_v16  ;;  %v1889_v48 = vld [vmem:[%s1988_s4] sm:$0xf] }
  0x4a   :  { %794 = vmatpush.bf16.msrb.mxu2 %v1338_v5  ;;  %v296_v62 = vperm.slane %v1889_v48, 1  ;;  %v1383_v5 = vld [vmem:[#allocation2 + $0x1a8] sm:$0xf0]  ;;  %v295_v12 = vperm.slane %v1889_v48, 0  ;;  %v297_v13 = vperm.slane %v1889_v48, 2  ;;  %v298_v35 = vperm.slane %v1889_v48, 3 }
  0x4b   :  { %804 = vmatpush.bf16.msra.mxu3 %v1426_v21  ;;  %v1378_v21 = vor.u32 %v1589_v9, %v1375_v11  ;;  %v1618_v48 = vld [vmem:[%s1991_s7 + $0x78] sm:$0xff] }
  0x4d   :  { %782 = vmatpush.bf16.msrb.mxu1 %v1266_v60  ;;  %770 = vmatpush.bf16.msra.mxu0 %v1194_v29 }
  0x4e   :  { %795 = vmatpush.bf16.msrb.mxu2 %v1330_v20 }
  0x4f   :  { %805 = vmatpush.bf16.msra.mxu3 %v1418_v33 }
  0x51   :  { %783 = vmatpush.bf16.msrb.mxu1 %v1258_v8  ;;  %771 = vmatpush.bf16.msra.mxu0 %v1186_v43  ;;  %v1386_v8 = vor.u32 %v1591_v4, %v1383_v5  ;;  %v1626_v4 = vld [vmem:[%s1993_s9 + $0x38] sm:$0xff] }
  0x52   :  { %796 = vmatpush.bf16.msrb.mxu2 %v1322_v32 }
  0x53   :  { %806 = vmatpush.bf16.msra.mxu3 %v1410_v49  ;;  %v1605_v49 = vld [vmem:[%s1991_s7 + $0x10] sm:$0xff] }
  0x55   :  { %784 = vmatpush.bf16.msrb.mxu1 %v1250_v26  ;;  %772 = vmatpush.bf16.msra.mxu0 %v1178_v54  ;;  %v1603_v54 = vld [vmem:[%s1991_s7] sm:$0xff] }
  0x56   :  { %797 = vmatpush.bf16.msrb.mxu2 %v1314_v46  ;;  %v1607_v46 = vld [vmem:[%s1991_s7 + $0x20] sm:$0xff] }
  0x57   :  { %807 = vmatpush.bf16.msra.mxu3 %v1402_v59 }
  0x59   :  { %785 = vmatpush.bf16.msrb.mxu1 %v1242_v36 }
  0x5a   :  { %798 = vmatpush.bf16.msrb.mxu2 %v1306_v58  ;;  %v1613_v58 = vld [vmem:[%s1991_s7 + $0x50] sm:$0xff] }
  0x5b   :  { %808 = vmatpush.bf16.msra.mxu3 %v1394_v3 }
  0x5f   :  { %809 = vmatpush.bf16.msra.mxu3 %v1386_v8 }
  0x63   :  { %810 = vmatpush.bf16.msra.mxu3 %v1378_v21 }
  0x67   :  { %811 = vmatpush.bf16.msra.mxu3 %v1370_v24 }
  0x8d   :  { %v1882_v15 = vpop.f32.mrf.mxu1 }
  0x94   :  { %v157_v37 = vpop.f32.mrf.mxu2  ;;  %v131_v50 = vpop.f32.mrf.mxu0 }
  0x95   :  { %v1884_v38 = vpop.f32.mrf.mxu3  ;;  %v146_v42 = vpop.f32.mrf.mxu1 }
  0x9c   :  { %v159_v60 = vpop.f32.mrf.mxu2  ;;  %v133_v7 = vpop.f32.mrf.mxu0 }
  0x9d   :  { %v172_v61 = vpop.f32.mrf.mxu3  ;;  %v263_v63 = vpop.f32.mrf.mxu1  ;;  %v1625_v7 = vld [vmem:[%s1993_s9 + $0x30] sm:$0xff] }
  0x9e   :  { %v264_v2 = vadd.f32 %v263_v63, %v1882_v15  ;;  %v1612_v61 = vld [vmem:[%s1991_s7 + $0x48] sm:$0xff] }
  0xa0   :  { %v304_v6 = vadd.f32 %v296_v62, %v264_v2  ;;  %v387_v62 = vld [vmem:[%s1990_s6] sm:$0x3] }
  0xa1   :  { %v389_v2 = vperm.slane %v387_v62, 0 }
  0xa2   :  { %vm308_vm3 = vcmp.gt.f32.partialorder %v304_v6, 0.0  ;;  %v312_v10 = vmul.f32 0.01, %v304_v6 }
  0xa4   :  { %v316_v14 = vsel %vm308_vm3, %v304_v6, %v312_v10  ;;  %v276_v17 = vpop.f32.mrf.mxu2 }
  0xa5   :  { %v250_v16 = vpop.f32.mrf.mxu3  ;;  %v320_v18 = vpack.c.bf16 %v316_v14, %v316_v14  ;;  %v277_v19 = vadd.f32 %v276_v17, %v157_v37  ;;  %v265_v20 = vpop.f32.mrf.mxu1  ;;  %v390_v17 = vperm.slane %v387_v62, 1 }
  0xa6   :  { %v251_v15 = vadd.f32 %v250_v16, %v131_v50  ;;  %v1617_v50 = vld [vmem:[%s1991_s7 + $0x70] sm:$0xff] }
  0xa7   :  { %v305_v26 = vadd.f32 %v297_v13, %v277_v19  ;;  %734 = vmatmul.bf16.vlgmr.msra.gmra.mxu1 %v320_v18 }
  0xa8   :  { %v303_v25 = vadd.f32 %v295_v12, %v251_v15  ;;  %970 = vmatpush.bf16.msra.mxu1 %v1618_v48 }
  0xa9   :  { %vm309_vm4 = vcmp.gt.f32.partialorder %v305_v26, 0.0  ;;  %v313_v28 = vmul.f32 0.01, %v305_v26 }
  0xaa   :  { %v311_v27 = vmul.f32 0.01, %v303_v25  ;;  %vm307_vm5 = vcmp.gt.f32.partialorder %v303_v25, 0.0 }
  0xab   :  { %v317_v29 = vsel %vm309_vm4, %v305_v26, %v313_v28 }
  0xac   :  { %v315_v30 = vsel %vm307_vm5, %v303_v25, %v311_v27  ;;  %v321_v31 = vpack.c.bf16 %v317_v29, %v317_v29  ;;  %v278_v34 = vpop.f32.mrf.mxu2  ;;  %971 = vmatpush.bf16.msra.mxu1 %v1617_v50 }
  0xad   :  { %v252_v32 = vpop.f32.mrf.mxu3  ;;  %v319_v33 = vpack.c.bf16 %v315_v30, %v315_v30  ;;  %v1624_v30 = vld [vmem:[%s1993_s9 + $0x28] sm:$0xff] }
  0xae   :  { %747 = vmatmul.bf16.vlgmr.msra.gmra.mxu2 %v321_v31  ;;  %v1622_v32 = vld [vmem:[%s1993_s9 + $0x18] sm:$0xff]  ;;  %v1620_v34 = vld [vmem:[%s1993_s9 + $0x8] sm:$0xff] }
  0xaf   :  { %721 = vmatmul.bf16.vlgmr.msrb.gmra.mxu0 %v319_v33  ;;  %1055 = vmatpush.bf16.msra.mxu2 %v1626_v4 }
  0xb0   :  { %957 = vmatpush.bf16.msrb.mxu0 %v1610_v44  ;;  %972 = vmatpush.bf16.msra.mxu1 %v1616_v52 }
  0xb3   :  { %1056 = vmatpush.bf16.msra.mxu2 %v1625_v7 }
  0xb4   :  { %973 = vmatpush.bf16.msra.mxu1 %v1615_v55 }
  0xb5   :  { %v289_v36 = vpop.f32.mrf.mxu3 }
  0xb6   :  { %v290_v37 = vadd.f32 %v289_v36, %v1884_v38  ;;  %v1609_v38 = vld [vmem:[%s1991_s7 + $0x30] sm:$0xff] }
  0xb7   :  { %786 = vmatmul.bf16.vlgmr.msrb.gmra.mxu1 %v320_v18  ;;  %958 = vmatpush.bf16.msrb.mxu0 %v1609_v38 }
  0xb8   :  { %v306_v39 = vadd.f32 %v298_v35, %v290_v37  ;;  %974 = vmatpush.bf16.msra.mxu1 %v1614_v56  ;;  %1057 = vmatpush.bf16.msra.mxu2 %v1624_v30  ;;  %v1619_v35 = vld [vmem:[%s1993_s9] sm:$0xff] }
  0xba   :  { %vm310_vm6 = vcmp.gt.f32.partialorder %v306_v39, 0.0  ;;  %v314_v40 = vmul.f32 0.01, %v306_v39 }
  0xbb   :  { %959 = vmatpush.bf16.msrb.mxu0 %v1608_v45 }
  0xbc   :  { %v318_v41 = vsel %vm310_vm6, %v306_v39, %v314_v40  ;;  %975 = vmatpush.bf16.msra.mxu1 %v1613_v58  ;;  %v1631_v39 = vld [vmem:[%s1992_s8] ss:$0 sm:$0xff]  ;;  %s1692_s8 = smov [#allocation5]  }
  0xbd   :  { %v322_v42 = vpack.c.bf16 %v318_v41, %v318_v41  ;;  %v291_v43 = vpop.f32.mrf.mxu3 }
  0xbe   :  { %799 = vmatmul.bf16.vlgmr.msrb.gmra.mxu2 %v321_v31  ;;  %v1623_v31 = vld [vmem:[%s1993_s9 + $0x20] sm:$0xff] }
  0xbf   :  { %760 = vmatmul.bf16.vlgmr.msrb.gmra.mxu3 %v322_v42  ;;  %773 = vmatmul.bf16.vlgmr.msra.gmra.mxu0 %v319_v33  ;;  %v1621_v33 = vld [vmem:[%s1993_s9 + $0x10] sm:$0xff]  ;;  %s1087_s9 = sshll.u32 %s1692_s8, 4  ;;  %s1088_s9 = int_to_ptr.vmem [resolvable:$true] %s1087_s9 }
  0xc0   :  { %960 = vmatpush.bf16.msrb.mxu0 %v1607_v46  ;;  %976 = vmatpush.bf16.msra.mxu1 %v1612_v61  ;;  %v1632_v46 = vld [vmem:[%s1994_s10] ss:$0 sm:$0xff] }
  0xc1   :  { %1058 = vmatpush.bf16.msra.mxu2 %v1623_v31 }
  0xc4   :  { %961 = vmatpush.bf16.msrb.mxu0 %v1606_v47  ;;  %977 = vmatpush.bf16.msra.mxu1 %v1611_v1 }
  0xc5   :  { %1059 = vmatpush.bf16.msra.mxu2 %v1622_v32 }
  0xc8   :  { %962 = vmatpush.bf16.msrb.mxu0 %v1605_v49 }
  0xc9   :  { %1060 = vmatpush.bf16.msra.mxu2 %v1621_v33 }
  0xcc   :  { %963 = vmatpush.bf16.msrb.mxu0 %v1604_v51 }
  0xcd   :  { %1061 = vmatpush.bf16.msra.mxu2 %v1620_v34 }
  0xcf   :  { %812 = vmatmul.bf16.vlgmr.msra.gmra.mxu3 %v322_v42 }
  0xd0   :  { %964 = vmatpush.bf16.msrb.mxu0 %v1603_v54 }
  0xd1   :  { %1062 = vmatpush.bf16.msra.mxu2 %v1619_v35 }
 0x124   :  { %v735_v53 = vpop.f32.mrf.mxu1 }
 0x12c   :  { %v722_v57 = vpop.f32.mrf.mxu0  ;;  %v737_v59 = vpop.f32.mrf.mxu1 }
 0x12d   :  { %v723_v5 = vadd.f32 %v722_v57, %v389_v2 }
 0x12f   :  { %v736_v9 = vadd.f32 %v735_v53, %v723_v5 }
 0x131   :  { %v748_v60 = vpop.f32.mrf.mxu2 }
 0x132   :  { %v749_v10 = vadd.f32 %v748_v60, %v736_v9 }
 0x134   :  { %v724_v63 = vpop.f32.mrf.mxu0  ;;  %v787_v0 = vpop.f32.mrf.mxu1 }
 0x139   :  { %v750_v3 = vpop.f32.mrf.mxu2 }
 0x13c   :  { %v774_v6 = vpop.f32.mrf.mxu0  ;;  %v789_v8 = vpop.f32.mrf.mxu1 }
 0x13d   :  { %v775_v20 = vadd.f32 %v774_v6, %v390_v17 }
 0x13f   :  { %v788_v22 = vadd.f32 %v787_v0, %v775_v20 }
 0x141   :  { %v800_v13 = vpop.f32.mrf.mxu2 }
 0x142   :  { %v761_v11 = vpop.f32.mrf.mxu3  ;;  %v801_v23 = vadd.f32 %v800_v13, %v788_v22 }
 0x143   :  { %v762_v12 = vadd.f32 %v761_v11, %v749_v10 }
 0x144   :  { %v776_v14 = vpop.f32.mrf.mxu0 }
 0x145   :  { %vm817_vm7 = vcmp.gt.f32.partialorder %v762_v12, 0.0  ;;  %v819_v16 = vmul.f32 0.01, %v762_v12 }
 0x147   :  { %v821_v18 = vsel %vm817_vm7, %v762_v12, %v819_v16 }
 0x148   :  { %v823_v15 = vpack.c.bf16 %v821_v18, %v821_v18 }
 0x149   :  { %v802_v21 = vpop.f32.mrf.mxu2 }
 0x14a   :  { %v763_v19 = vpop.f32.mrf.mxu3  ;;  %965 = vmatmul.bf16.vlgmr.msrb.gmra.mxu0 %v823_v15 }
 0x152   :  { %v813_v25 = vpop.f32.mrf.mxu3 }
 0x153   :  { %v814_v26 = vadd.f32 %v813_v25, %v801_v23 }
 0x155   :  { %vm818_vm8 = vcmp.gt.f32.partialorder %v814_v26, 0.0  ;;  %v820_v24 = vmul.f32 0.01, %v814_v26 }
 0x157   :  { %v822_v27 = vsel %vm818_vm8, %v814_v26, %v820_v24 }
 0x158   :  { %v824_v28 = vpack.c.bf16 %v822_v27, %v822_v27 }
 0x15a   :  { %v815_v29 = vpop.f32.mrf.mxu3  ;;  %978 = vmatmul.bf16.vlgmr.msra.gmra.mxu1 %v824_v28 }
 0x1c7   :  { %v966_v36 = vpop.f32.mrf.mxu0 }
 0x1c8   :  { %v967_v40 = vadd.f32 %v1631_v39, %v966_v36 }
 0x1cf   :  { %v968_v37 = vpop.f32.mrf.mxu0 }
 0x1d7   :  { %v979_v41 = vpop.f32.mrf.mxu1 }
 0x1d8   :  { %v980_v42 = vadd.f32 %v979_v41, %v967_v40 }
 0x1da   :  { %vm983_vm9 = vcmp.gt.f32.partialorder %v980_v42, 0.0  ;;  %v984_v43 = vmul.f32 0.01, %v980_v42 }
 0x1dc   :  { %v985_v44 = vsel %vm983_vm9, %v980_v42, %v984_v43 }
 0x1dd   :  { %v986_v38 = vpack.c.bf16 %v985_v44, %v985_v44 }
 0x1df   :  { %v981_v45 = vpop.f32.mrf.mxu1  ;;  %1063 = vmatmul.bf16.vlgmr.msra.gmra.mxu2 %v986_v38 }
 0x262   :  { %v1064_v47 = vpop.f32.mrf.mxu2 }
 0x263   :  { %v1065_v48 = vadd.f32 %v1632_v46, %v1064_v47 }
 0x265   :  { %v1069_v49 = vsel %vm1068_vm10, %v1065_v48, -inf }
 0x266   :  { %1070 = vmax.xlane.f32.xlu0 %v1069_v49 }
 0x26a   :  { %v1066_v50 = vpop.f32.mrf.mxu2 }
 0x2d9   :  { %v1071_v51 = vpop.xlane.xlu0 %1070 }
 0x2da   :  { %v1072_v52 = vsub.f32 %v1065_v48, %v1071_v51 }
 0x2dc   :  { %v1073_v53 = vmul.f32 1.442695, %v1072_v52 }
 0x2de   :  { %1633 = vpow2.f32 %v1073_v53 }
 0x2e4   :  { %v1634_v54 = vpop.eup %1633 }
 0x2e5   :  { %v1075_v55 = vsel %vm1068_vm10, %v1634_v54, 0.0 }
 0x2e6   :  { %1076 = vadd.xlane.f32.xlu0 %v1075_v55 }
 0x359   :  { %v1077_v56 = vpop.xlane.xlu0 %1076 }
 0x35a   :  { %1635 = vlog2.f32 %v1077_v56 }
 0x360   :  { %v1636_v57 = vpop.eup %1635 }
 0x361   :  { %v1079_v58 = vmul.f32 0.6931472, %v1636_v57 }
 0x363   :  { %v1080_v59 = vsub.f32 %v1072_v52, %v1079_v58 }
 0x365   :  { %1081 = vst.msk [vmem:[#allocation5] sm:$0x3] %vm1068_vm10, %v1080_v59 }
 0x366   :  { %1092 = dma.vmem_to_hbm [thread:$0]  %s1088_s9, 32, %s1090_s14, [#allocation4]  }
 0x367   :  { %1687 = dma.done.wait [#allocation4], 32  }
 0x368   :  { %1688 = vsyncadd [#allocation4], 4294967264 }
 0x369   :  { %1097 = vsyncpa [#allocation3], 1 }
 0x36a   :  { %1098 = vsyncpa [#allocation4], 1 }

</bundles_post_ra>
